<compile_context>
chip_gen: v6e
topology: v6e:2x2x1
jax: 0.10.0
libtpu: 0.0.40
codegen_flags: <defaults>
</compile_context>

<pallas_src>
from functools import partial

import jax
import jax.numpy as jnp
from jax.experimental import pallas as pl
from jax.experimental.pallas import tpu as pltpu

NEG_BIG = -1e30   # finite mask sentinel; rows with >=1 neighbour behave exactly like -inf.
                  # NOTE: a row with zero neighbours gets a *uniform* softmax (the torch -inf
                  # reference gives NaN there); callers must guarantee >=1 edge per row.

_INV = lambda i: (0, 0)   # invariant operand (same block every grid step)
_ROW = lambda i: (i, 0)   # row-tiled operand


# ----------------------------------------------------------------------------
# Kernel bodies
# ----------------------------------------------------------------------------
def adj_binarize_kernel(p_ref, c_ref, o_ref):
    """adj_matrix = (adj_parent + adj_child) > 0, emitted as an int8 0/1 mask."""
    o_ref[...] = ((p_ref[...] + c_ref[...]) > 0.0).astype(o_ref.dtype)


def _head_scores(g, a_row, nheads, fdim):
    """Per-head attention scalars: s[:, h] = sum_f g[:, h*F+f] * a[h*F+f].  -> (rows, H) f32."""
    ga = g * a_row
    return jnp.concatenate(
        [jnp.sum(ga[:, h * fdim:(h + 1) * fdim], axis=1, keepdims=True)
         for h in range(nheads)], axis=1)


def _attention_heads(s1q, s2T, adj_bias, g_all, *, alpha, nheads, fdim, cd):
    """All heads of one GAT layer for a tile of query rows.

    s1q: (tq, H) query-side scalars, s2T: (H, N) key-side scalars (precomputed once per node),
    adj_bias: (tq, N) 0/-1e30, g_all: (N, H*F) keys/values in compute dtype.
    Returns hp_all (tq, H*F) f32 = lane-concat over heads of ELU(softmax(mask(leaky(e_h))) @ g_h),
    so the caller can run the output Linear as a single K=H*F (=128) matmul.
    """
    approx = cd != jnp.float32
    hps = []
    for h in range(nheads):
        e = s1q[:, h:h + 1] + s2T[h:h + 1, :]                         # (tq, N) f32
        e = jnp.where(e > 0, e, alpha * e) + adj_bias                 # LeakyReLU + finite mask
        m = jnp.max(e, axis=1, keepdims=True)                         # finite (>= -1e30)
        p = jnp.exp(e - m)
        inv = pl.reciprocal(jnp.sum(p, axis=1, keepdims=True), approx=approx)   # EUP slot
        attn = (p * inv).astype(cd)
        hp = jnp.dot(attn, g_all[:, h * fdim:(h + 1) * fdim],
                     preferred_element_type=jnp.float32)              # (tq, F), K = N
        # ELU with the exp argument clamped (== exp(x)-1 for x<0, no inf in the dead branch)
        hps.append(jnp.where(hp > 0, hp, jnp.exp(jnp.minimum(hp, 0.0)) - 1.0))
    return jnp.concatenate(hps, axis=1)                               # (tq, H*F) f32


def gat_proj_kernel(x_ref, w_ref, a1_ref, a2_ref, g_ref, s1_ref, s2_ref, *, nheads, fdim):
    """g = x @ W_cat (all heads, lane-dense) plus the per-node attention scalars s1, s2."""
    g = jnp.dot(x_ref[...], w_ref[...], preferred_element_type=jnp.float32)    # (tq, H*F) f32
    g_ref[...] = g.astype(g_ref.dtype)
    s1_ref[...] = _head_scores(g, a1_ref[...], nheads, fdim)
    s2_ref[...] = _head_scores(g, a2_ref[...], nheads, fdim)


def gat_attn1_kernel(s1_ref, g_ref, s2T_ref, adj_ref, ow_ref, ob_ref,
                     w2_ref, a1n_ref, a2n_ref,
                     g2_ref, s1n_ref, s2n_ref, *, alpha, nheads, fdim, compute_dtype):
    """Layer-1 attention + output Linear, fused with the layer-2 projection, for one row tile."""
    cd = compute_dtype
    adj_bias = jnp.where(adj_ref[...] > 0, 0.0, NEG_BIG)
    hp_all = _attention_heads(s1_ref[...], s2T_ref[...], adj_bias, g_ref[...],
                              alpha=alpha, nheads=nheads, fdim=fdim, cd=cd)
    l1 = jnp.dot(hp_all.astype(cd), ow_ref[...],
                 preferred_element_type=jnp.float32) + ob_ref[...]              # (tq, Din)
    g2 = jnp.dot(l1.astype(cd), w2_ref[...], preferred_element_type=jnp.float32)
    g2_ref[...] = g2.astype(g2_ref.dtype)
    s1n_ref[...] = _head_scores(g2, a1n_ref[...], nheads, fdim)
    s2n_ref[...] = _head_scores(g2, a2n_ref[...], nheads, fdim)


def gat_attn2_kernel(s1_ref, g_ref, s2T_ref, adj_ref, ow_ref, ob_ref, out_ref, *,
                     alpha, nheads, fdim, compute_dtype):
    """Layer-2 attention + (lane-padded) output Linear for one row tile."""
    cd = compute_dtype
    adj_bias = jnp.where(adj_ref[...] > 0, 0.0, NEG_BIG)
    hp_all = _attention_heads(s1_ref[...], s2T_ref[...], adj_bias, g_ref[...],
                              alpha=alpha, nheads=nheads, fdim=fdim, cd=cd)
    out = jnp.dot(hp_all.astype(cd), ow_ref[...],
                  preferred_element_type=jnp.float32) + ob_ref[...]
    out_ref[...] = out.astype(out_ref.dtype)


# ----------------------------------------------------------------------------
# pallas_call wrappers
# ----------------------------------------------------------------------------
def build_adj_matrix(adj_parent, adj_child, *, row_tile=256):
    """int8 0/1 adjacency (4x less HBM/VMEM than f32; all consumers only test > 0)."""
    N, M = adj_parent.shape
    tr = row_tile if N % row_tile == 0 else N          # init-time op; one block for odd N
    return pl.pallas_call(
        adj_binarize_kernel,
        out_shape=jax.ShapeDtypeStruct((N, M), jnp.int8),
        grid=(N // tr,),
        in_specs=[pl.BlockSpec((tr, M), _ROW),
                  pl.BlockSpec((tr, M), _ROW)],
        out_specs=pl.BlockSpec((tr, M), _ROW),
        compiler_params=pltpu.CompilerParams(dimension_semantics=("parallel",)),
    )(adj_parent, adj_child)


def gat_proj(x, w_cat, a1_row, a2_row, *, tq, nheads, fdim, compute_dtype):
    N, Din = x.shape
    HF = w_cat.shape[1]
    assert N % tq == 0, "row-tiled path assumes N % tq == 0 (no remainder handling)"
    return pl.pallas_call(
        partial(gat_proj_kernel, nheads=nheads, fdim=fdim),
        out_shape=(jax.ShapeDtypeStruct((N, HF), compute_dtype),
                   jax.ShapeDtypeStruct((N, nheads), jnp.float32),
                   jax.ShapeDtypeStruct((N, nheads), jnp.float32)),
        grid=(N // tq,),
        in_specs=[pl.BlockSpec((tq, Din), _ROW),
                  pl.BlockSpec((Din, HF), _INV),
                  pl.BlockSpec((1, HF), _INV),
                  pl.BlockSpec((1, HF), _INV)],
        out_specs=(pl.BlockSpec((tq, HF), _ROW),
                   pl.BlockSpec((tq, nheads), _ROW),
                   pl.BlockSpec((tq, nheads), _ROW)),
        compiler_params=pltpu.CompilerParams(dimension_semantics=("parallel",)),
    )(x.astype(compute_dtype), w_cat, a1_row, a2_row)


def gat_attn_layer1(s1, g_all, s2T, adj_i8, out_w, out_b, w_next, a1_next, a2_next, *,
                    alpha, nheads, fdim, tq, compute_dtype):
    N, HF = g_all.shape
    assert N % tq == 0 and tq % 32 == 0, "int8 adjacency tiling needs tq % 32 == 0"
    return pl.pallas_call(
        partial(gat_attn1_kernel, alpha=alpha, nheads=nheads, fdim=fdim,
                compute_dtype=compute_dtype),
        out_shape=(jax.ShapeDtypeStruct((N, HF), compute_dtype),
                   jax.ShapeDtypeStruct((N, nheads), jnp.float32),
                   jax.ShapeDtypeStruct((N, nheads), jnp.float32)),
        grid=(N // tq,),
        in_specs=[pl.BlockSpec((tq, nheads), _ROW),     # s1 (query-side scalars, tiled)
                  pl.BlockSpec((N, HF), _INV),          # g_all (keys/values, invariant)
                  pl.BlockSpec((nheads, N), _INV),      # s2^T (key-side scalars, invariant)
                  pl.BlockSpec((tq, N), _ROW),          # int8 adjacency block
                  pl.BlockSpec(out_w.shape, _INV),
                  pl.BlockSpec(out_b.shape, _INV),
                  pl.BlockSpec(w_next.shape, _INV),     # layer-2 projection (fused epilogue)
                  pl.BlockSpec(a1_next.shape, _INV),
                  pl.BlockSpec(a2_next.shape, _INV)],
        out_specs=(pl.BlockSpec((tq, HF), _ROW),
                   pl.BlockSpec((tq, nheads), _ROW),
                   pl.BlockSpec((tq, nheads), _ROW)),
        compiler_params=pltpu.CompilerParams(dimension_semantics=("parallel",)),
    )(s1, g_all, s2T, adj_i8, out_w, out_b, w_next, a1_next, a2_next)


def gat_attn_layer2(s1, g_all, s2T, adj_i8, out_w_pad, out_b_pad, *,
                    alpha, nheads, fdim, tq, compute_dtype):
    N, HF = g_all.shape
    Dout = out_w_pad.shape[1]
    assert N % tq == 0 and tq % 32 == 0
    return pl.pallas_call(
        partial(gat_attn2_kernel, alpha=alpha, nheads=nheads, fdim=fdim,
                compute_dtype=compute_dtype),
        out_shape=jax.ShapeDtypeStruct((N, Dout), jnp.float32),
        grid=(N // tq,),
        in_specs=[pl.BlockSpec((tq, nheads), _ROW),
                  pl.BlockSpec((N, HF), _INV),
                  pl.BlockSpec((nheads, N), _INV),
                  pl.BlockSpec((tq, N), _ROW),
                  pl.BlockSpec(out_w_pad.shape, _INV),
                  pl.BlockSpec(out_b_pad.shape, _INV)],
        out_specs=pl.BlockSpec((tq, Dout), _ROW),       # lane-dense (padded) writeback
        compiler_params=pltpu.CompilerParams(dimension_semantics=("parallel",)),
    )(s1, g_all, s2T, adj_i8, out_w_pad, out_b_pad)


def gat_forward_tiled(x, adj_i8, pk, *, alpha, nheads, fdim, tq, enc_out,
                      compute_dtype=jnp.bfloat16):
    """Row-tiled 2-layer multi-head GAT: proj -> attn1 (+ fused layer-2 proj) -> attn2."""
    g1, s1_1, s2_1 = gat_proj(x, pk["W1"], pk["a1_1"], pk["a2_1"],
                              tq=tq, nheads=nheads, fdim=fdim, compute_dtype=compute_dtype)
    g2, s1_2, s2_2 = gat_attn_layer1(
        s1_1, g1, jnp.transpose(s2_1), adj_i8,
        pk["out_w"], pk["out_b"], pk["W2"], pk["a1_2"], pk["a2_2"],
        alpha=alpha, nheads=nheads, fdim=fdim, tq=tq, compute_dtype=compute_dtype)
    out_pad = gat_attn_layer2(
        s1_2, g2, jnp.transpose(s2_2), adj_i8, pk["out2_w_pad"], pk["out2_b_pad"],
        alpha=alpha, nheads=nheads, fdim=fdim, tq=tq, compute_dtype=compute_dtype)
    return out_pad[:, :enc_out]


# ----------------------------------------------------------------------------
# `Straight` module equivalent (the actual spec: forward is a pass-through)
# ----------------------------------------------------------------------------
class StraightPallas:
    def __init__(self, adj_parent, adj_child, label_matrix, num_layers=2, hid_q=256,
                 nheads=4, dropout=0, alpha=0.2, encoder_output_size=32, **kwargs):
        self.label_mat = label_matrix
        self.adj_parent = adj_parent
        self.adj_child = adj_child
        # int8 0/1 mask instead of the torch float buffer (values identical; dtype is a perf
        # optimisation so the GAT kernels stream 4x less adjacency data).
        self.adj_matrix = build_adj_matrix(adj_parent, adj_child)
        self.saved_matrix = self.label_mat

    def save_matrix(self, matrix):
        self.saved_matrix = matrix

    def load_matrix(self):
        if self.saved_matrix is None:
            return self.forward(train=True)
        return self.saved_matrix

    def forward(self, train=True):
        # TODO(synk): forward performs no tensor computation (Python-side buffer caching only),
        # so there is no kernel to launch here.
        if train is False and self.saved_matrix is not None:
            return self.load_matrix()
        result = self.label_mat
        self.save_matrix(result)
        return result


# ----------------------------------------------------------------------------
# Pure-JAX reference for the GAT compute (matches the torch math of the sibling class)
# ----------------------------------------------------------------------------
def gat_head_ref(h, w, a1, a2, adj, alpha):
    g = h @ w
    e = (g @ a1) + (g @ a2).T
    e = jnp.where(e > 0, e, alpha * e)
    e = jnp.where(adj > 0, e, -jnp.inf)
    attn = jax.nn.softmax(e, axis=1)
    hp = attn @ g
    return jnp.where(hp > 0, hp, jnp.exp(hp) - 1.0)


def gat_forward_ref(label_mat, adj, params, alpha):
    h1 = jnp.concatenate(
        [gat_head_ref(label_mat, p["W"], p["a1"], p["a2"], adj, alpha)
         for p in params["attentions"]], axis=1)
    l1 = h1 @ params["out_w"] + params["out_b"]
    h2 = jnp.concatenate(
        [gat_head_ref(l1, p["W"], p["a1"], p["a2"], adj, alpha)
         for p in params["attentions_layer2"]], axis=1)
    return h2 @ params["out2_w"] + params["out2_b"]


# ----------------------------------------------------------------------------
# Deterministic parameters
# ----------------------------------------------------------------------------
def xavier_uniform(key, shape, gain=1.414):
    fan_in, fan_out = shape[0], shape[1]
    limit = gain * (6.0 / (fan_in + fan_out)) ** 0.5
    return jax.random.uniform(key, shape, jnp.float32, -limit, limit)


def make_params(key, input_dim, hid_q, nheads, enc_out):
    keys = iter(jax.random.split(key, 8 * nheads + 8))

    def make_head():
        W = xavier_uniform(next(keys), (input_dim, hid_q))
        a = xavier_uniform(next(keys), (2 * hid_q, 1))
        return {"W": W, "a1": a[:hid_q, :], "a2": a[hid_q:, :]}

    params = {
        "attentions": [make_head() for _ in range(nheads)],
        "out_w": xavier_uniform(next(keys), (hid_q * nheads, input_dim), gain=1.0),
        "out_b": jax.random.normal(next(keys), (1, input_dim), jnp.float32) * 0.01,
        "out2_w": xavier_uniform(next(keys), (hid_q * nheads, enc_out), gain=1.0),
        "out2_b": jax.random.normal(next(keys), (1, enc_out), jnp.float32) * 0.01,
    }
    params["attentions_layer2"] = [make_head() for _ in range(nheads)]
    return params


def pack_params(params, *, compute_dtype=jnp.bfloat16, lane=128):
    """Pack per-head params into the lane-dense layout the kernels consume.

    Weights feeding the MXU are stored in compute_dtype (bf16 default); a1/a2 and biases stay
    f32 (score/softmax math stays f32). out2_w/out2_b are zero-padded to a 128-lane multiple so
    the layer-2 writeback is lane-dense (the pad columns are exactly zero and sliced off later).
    """
    def pack_layer(heads):
        W = jnp.concatenate([p["W"] for p in heads], axis=1).astype(compute_dtype)
        a1 = jnp.concatenate([p["a1"].T for p in heads], axis=1)   # (1, nheads*F) f32
        a2 = jnp.concatenate([p["a2"].T for p in heads], axis=1)
        return W, a1, a2

    W1, a11, a21 = pack_layer(params["attentions"])
    W2, a12, a22 = pack_layer(params["attentions_layer2"])
    enc_out = params["out2_w"].shape[1]
    pad = (-enc_out) % lane
    return {
        "W1": W1, "a1_1": a11, "a2_1": a21,
        "out_w": params["out_w"].astype(compute_dtype), "out_b": params["out_b"],
        "W2": W2, "a1_2": a12, "a2_2": a22,
        "out2_w_pad": jnp.pad(params["out2_w"], ((0, 0), (0, pad))).astype(compute_dtype),
        "out2_b_pad": jnp.pad(params["out2_b"], ((0, 0), (0, pad))),
    }


# ----------------------------------------------------------------------------
if __name__ == "__main__":
    key = jax.random.PRNGKey(0)
    ks = jax.random.split(key, 7)

    input_dim, hid_q, nheads, enc_out, alpha = 128, 32, 4, 32, 0.2   # nheads*hid_q = 128 lanes

    # ---- Straight module semantics (pass-through forward + init-time adj binarize) --------
    N1 = 32
    label1 = jax.random.normal(ks[0], (N1, input_dim), jnp.float32)
    adj_p1 = (jax.random.uniform(ks[1], (N1, N1)) > 0.7).astype(jnp.float32)
    adj_c1 = ((jax.random.uniform(ks[2], (N1, N1)) > 0.7).astype(jnp.float32)
              + jnp.eye(N1, dtype=jnp.float32))
    module = StraightPallas(adj_p1, adj_c1, label1, hid_q=hid_q, nheads=nheads,
                            alpha=alpha, encoder_output_size=enc_out)
    adj1 = jax.block_until_ready(module.adj_matrix)
    assert adj1.dtype == jnp.int8
    assert jnp.array_equal(adj1, (adj_p1 + adj_c1 > 0).astype(jnp.int8))
    res_train = jax.block_until_ready(module.forward(train=True))
    assert res_train.shape == (N1, input_dim) and jnp.array_equal(res_train, label1)
    assert jnp.array_equal(module.forward(train=False), label1)      # load_matrix path

    # ---- Row-tiled GAT kernels (carried over from previous translation, perf-optimized) ---
    N2, TQ = 256, 128      # >= 2 grid steps -> shards across v7x's 2 TCs; TQ % 32 == 0 (int8 adj)
    label2 = jax.random.normal(ks[3], (N2, input_dim), jnp.float32)
    adj_p2 = (jax.random.uniform(ks[4], (N2, N2)) > 0.9).astype(jnp.float32)
    adj_c2 = ((jax.random.uniform(ks[5], (N2, N2)) > 0.9).astype(jnp.float32)
              + jnp.eye(N2, dtype=jnp.float32))   # every row has >= 1 neighbour (see NEG_BIG note)
    adj2 = build_adj_matrix(adj_p2, adj_c2)

    params = make_params(ks[6], input_dim, hid_q, nheads, enc_out)
    with jax.default_matmul_precision("float32"):
        ref = gat_forward_ref(label2, (adj_p2 + adj_c2 > 0).astype(jnp.float32), params, alpha)

    # bf16 MXU operands (default; native on v6e/v7x) — f32 score/softmax math, looser tolerance.
    out_bf16 = jax.block_until_ready(
        gat_forward_tiled(label2, adj2, pack_params(params, compute_dtype=jnp.bfloat16),
                          alpha=alpha, nheads=nheads, fdim=hid_q, tq=TQ, enc_out=enc_out,
                          compute_dtype=jnp.bfloat16))
    assert out_bf16.shape == (N2, enc_out)
    assert jnp.all(jnp.isfinite(out_bf16))
    err_bf16 = float(jnp.max(jnp.abs(out_bf16 - ref)))
    assert jnp.allclose(out_bf16, ref, rtol=6e-2, atol=6e-2), err_bf16

    # f32 MXU operands — tight check against the reference.
    out_f32 = jax.block_until_ready(
        gat_forward_tiled(label2, adj2, pack_params(params, compute_dtype=jnp.float32),
                          alpha=alpha, nheads=nheads, fdim=hid_q, tq=TQ, enc_out=enc_out,
                          compute_dtype=jnp.float32))
    err_f32 = float(jnp.max(jnp.abs(out_f32 - ref)))
    assert jnp.allclose(out_f32, ref, rtol=3e-3, atol=3e-3), err_f32

    print("KERNEL_OK")
</pallas_src>

<mosaic_0001>
module attributes {stable_mosaic.version = 11 : i64} {
  func.func @adj_binarize_kernel(%arg0: i32, %arg1: memref<32x32xf32, #tpu.memory_space<vmem>>, %arg2: memref<32x32xf32, #tpu.memory_space<vmem>>, %arg3: memref<32x32xi8, #tpu.memory_space<vmem>>) attributes {dimension_semantics = [#tpu.dimension_semantics<parallel>], iteration_bounds = array<i64: 1>, scalar_prefetch = 0 : i64, scratch_operands = 0 : i64, tpu.core_type = #tpu.core_type<tc>, window_params = [{transform_indices = @transform_0, window_bounds = array<i64: 32, 32>}, {transform_indices = @transform_1, window_bounds = array<i64: 32, 32>}, {transform_indices = @transform_2, window_bounds = array<i64: 32, 32>}]} {
    %c0 = arith.constant 0 : index
    %c0_0 = arith.constant 0 : index
    %0 = vector.load %arg1[%c0, %c0_0] : memref<32x32xf32, #tpu.memory_space<vmem>>, vector<32x32xf32>
    %c0_1 = arith.constant 0 : index
    %c0_2 = arith.constant 0 : index
    %1 = vector.load %arg2[%c0_1, %c0_2] : memref<32x32xf32, #tpu.memory_space<vmem>>, vector<32x32xf32>
    %2 = arith.addf %0, %1 : vector<32x32xf32>
    %cst = arith.constant 0.000000e+00 : f32
    %3 = vector.broadcast %cst : f32 to vector<32x32xf32>
    %4 = arith.cmpf ogt, %2, %3 : vector<32x32xf32>
    %5 = arith.extui %4 : vector<32x32xi1> to vector<32x32xi8>
    %c0_3 = arith.constant 0 : index
    %c0_4 = arith.constant 0 : index
    %6 = vector.load %arg3[%c0_3, %c0_4] : memref<32x32xi8, #tpu.memory_space<vmem>>, vector<32x32xi8>
    tpu.vector_store %arg3[%c0_3, %c0_4], %5 {strides = array<i32>} : memref<32x32xi8, #tpu.memory_space<vmem>>, vector<32x32xi8>,
    return
  }
  func.func @transform_0(%arg0: i32) -> (i32, i32) {
    %c0_i32 = arith.constant 0 : i32
    %c0_i32_0 = arith.constant 0 : i32
    return %arg0, %c0_i32 : i32, i32
  }
  func.func @transform_1(%arg0: i32) -> (i32, i32) {
    %c0_i32 = arith.constant 0 : i32
    %c0_i32_0 = arith.constant 0 : i32
    return %arg0, %c0_i32 : i32, i32
  }
  func.func @transform_2(%arg0: i32) -> (i32, i32) {
    %c0_i32 = arith.constant 0 : i32
    %c0_i32_0 = arith.constant 0 : i32
    return %arg0, %c0_i32 : i32, i32
  }
}

</mosaic_0001>

<bundles_post_ra>
// kernel: tpu_custom_call.1
= control target key start
LH: loop header
LB: loop body
LE: loop exit
PB: predicated region body
PF: predicated region fallthrough
CT: control target
= control target key end

     0   :  { %7 = vsyncpa [#allocation3], 0  ;;  %s182_s0 = inlined_call_operand.hbm [shape: f32[32,32], index: 0, kind: input, shape index: {}]   ;;  %s183_s1 = inlined_call_operand.hbm [shape: f32[32,32], index: 1, kind: input, shape index: {}]   ;;  %s184_s2 = inlined_call_operand.hbm [shape: s8[32,32], index: 2, kind: output, shape index: {}]  }
   0x1   :  { %8 = vsyncpa [#allocation6], 0 }
   0x2   :  { %9 = vsyncpa [#allocation4], 0  ;;  %s152_s9 = smov [#allocation2]  }
   0x3   :  { %s15_s10 = sshll.u32 %s152_s9, 4  ;;  %s16_s10 = int_to_ptr.vmem [resolvable:$true] %s15_s10 }
   0x4   :  { %s94_s11 = scalar_lea.vmem %s16_s10, 512  ;;  %p99_p1 = scmp.lt.s32.totalorder %s16_s10, %s16_s10 }
   0x5   :  { %p95_p0 = scmp.ne.s32.totalorder %s16_s10, %s94_s11  ;;  %p100_p2 = scmp.lt.s32.totalorder %s94_s11, %s94_s11 }
   0x7   :  { %p101_p3 = por %p100_p2, %p99_p1 }
   0x9   :  { %p102_p4 = pnand %p101_p3, %p95_p0 }
   0xb   :  { %105 = shalt.err (!%p102_p4)
}
   0xc   :  { %s153_s12 = smov 128   ;;  %s154_s13 = smov 8  }
   0xd   :  { %21 = dma.hbm_to_vmem [thread:$0]  %s182_s0, 512, %s16_s10, [#allocation3], %s153_s12, %s153_s12, %s154_s13  }
   0xe   :  { %s155_s16 = smov [#allocation5]  }
   0xf   :  { %s27_s17 = sshll.u32 %s155_s16, 4  ;;  %s28_s17 = int_to_ptr.vmem [resolvable:$true] %s27_s17 }
  0x10   :  { %s114_s18 = scalar_lea.vmem %s28_s17, 512  ;;  %p119_p6 = scmp.lt.s32.totalorder %s28_s17, %s28_s17 }
  0x11   :  { %p115_p5 = scmp.ne.s32.totalorder %s28_s17, %s114_s18  ;;  %p120_p7 = scmp.lt.s32.totalorder %s114_s18, %s114_s18 }
  0x13   :  { %p121_p8 = por %p120_p7, %p119_p6 }
  0x15   :  { %p122_p9 = pnand %p121_p8, %p115_p5 }
  0x17   :  { %125 = shalt.err (!%p122_p9)
}
  0x18   :  { %33 = dma.hbm_to_vmem [thread:$0]  %s183_s1, 512, %s28_s17, [#allocation6], %s153_s12, %s153_s12, %s154_s13  }
  0x19   :  { %146 = dma.done.wait [#allocation3], 512  }
  0x1a   :  { %147 = vsyncadd [#allocation3], 4294966784 }
  0x1b   :  { %148 = dma.done.wait [#allocation6], 512  }
  0x1c   :  { %149 = vsyncadd [#allocation6], 4294966784  ;;  %v42_v0 = vld [vmem:[#allocation2] sm:$0xff]  ;;  %v43_v1 = vld [vmem:[#allocation2 + $0x8] sm:$0xff]  ;;  %s156_s0 = smov [#allocation7]   ;;  %vm62_vm6 = vcmask 261120  }
  0x1d   :  { %v44_v2 = vld [vmem:[#allocation2 + $0x10] sm:$0xff]  ;;  %v45_v3 = vld [vmem:[#allocation2 + $0x18] sm:$0xff]  ;;  %v46_v4 = vld [vmem:[#allocation5] sm:$0xff]  ;;  %s70_s1 = sshll.u32 %s156_s0, 4  ;;  %v157_v12 = vmov 0   ;;  %s71_s1 = int_to_ptr.vmem [resolvable:$true] %s70_s1 }
  0x1e   :  { %v47_v5 = vld [vmem:[#allocation5 + $0x8] sm:$0xff]  ;;  %v48_v6 = vld [vmem:[#allocation5 + $0x10] sm:$0xff]  ;;  %v49_v7 = vld [vmem:[#allocation5 + $0x18] sm:$0xff]  ;;  %v50_v8 = vadd.f32 %v46_v4, %v42_v0  ;;  %s126_s21 = scalar_lea.vmem %s71_s1, 128  ;;  %p131_p11 = scmp.lt.s32.totalorder %s71_s1, %s71_s1 }
  0x1f   :  { %v51_v9 = vadd.f32 %v47_v5, %v43_v1  ;;  %v52_v10 = vadd.f32 %v48_v6, %v44_v2  ;;  %v53_v11 = vadd.f32 %v49_v7, %v45_v3  ;;  %p127_p10 = scmp.ne.s32.totalorder %s71_s1, %s126_s21  ;;  %p132_p12 = scmp.lt.s32.totalorder %s126_s21, %s126_s21 }
  0x20   :  { %vm54_vm0 = vcmp.gt.f32.partialorder %v50_v8, 0.0 }
  0x21   :  { %vm55_vm1 = vcmp.gt.f32.partialorder %v51_v9, 0.0  ;;  %vm56_vm2 = vcmp.gt.f32.partialorder %v52_v10, 0.0  ;;  %vm57_vm3 = vcmp.gt.f32.partialorder %v53_v11, 0.0  ;;  %p133_p13 = por %p132_p12, %p131_p11 }
  0x22   :  { %vm58_vm4 = vmpackc.low %vm55_vm1, %vm54_vm0 }
  0x23   :  { %vm59_vm5 = vmpackc.low %vm57_vm3, %vm56_vm2  ;;  %p134_p0 = pnand %p133_p13, %p127_p10 }
  0x24   :  { %vm60_vm7 = vmpackc.even %vm59_vm5, %vm58_vm4 }
  0x25   :  { %v61_v13 = vsel %vm60_vm7, 16843009, %v157_v12 }
  0x26   :  { %63 = vst.msk [vmem:[#allocation7] sm:$0xff] %vm62_vm6, %v61_v13 }
  0x27   :  { %137 = shalt.err (!%p134_p0)
}
  0x28   :  { %73 = dma.vmem_to_hbm [thread:$0]  %s71_s1, 128, %s184_s2, [#allocation4]  }
  0x29   :  { %150 = dma.done.wait [#allocation4], 128  }
  0x2a   :  { %151 = vsyncadd [#allocation4], 4294967168 }
  0x2b   :  { %77 = vsyncpa [#allocation3], 1 }
  0x2c   :  { %78 = vsyncpa [#allocation6], 1 }
  0x2d   :  { %79 = vsyncpa [#allocation4], 1 }

</bundles_post_ra>
